<compile_context>
chip_gen: v7x
topology: tpu7x:2x2x1
jax: 0.10.0
libtpu: 0.0.40
codegen_flags: <defaults>
</compile_context>

<pallas_src>
import functools

import jax
import jax.numpy as jnp
import numpy as np
from jax import lax
from jax.experimental import pallas as pl
from jax.experimental.pallas import tpu as pltpu

NEG = -1e30  # additive mask value (avoids NaNs of literal -inf for fully-masked rows)


# ---------------------------------------------------------------------------
# Kernel bodies
# ---------------------------------------------------------------------------
def _attention_core(cls_ref, q_ref, k_ref, v_ref, kpb_ref,
                    wq_ref, bq_ref, wk_ref, bk_ref,
                    *, n_sep, tq, compute_dtype, need_weights):
    """Returns (o_p, o_n, w_p, w_n) in float32 (w_* only if need_weights)."""
    cd = compute_dtype
    b = pl.program_id(0)
    qi = pl.program_id(1)

    q = q_ref[...]            # (tq, H)  compute dtype
    k = k_ref[...]            # (S,  H)  compute dtype
    v = v_ref[...]            # (S,  H)  compute dtype
    kpb = kpb_ref[...]        # (1,  S)  f32 additive key-padding bias (0 / NEG)
    wq_t = wq_ref[...]        # (H,  H)  compute dtype (Wq.weight.T)
    wk_t = wk_ref[...]        # (H,  H)  compute dtype (Wk.weight.T)
    bq = bq_ref[...]          # (1,  H)  f32
    bk = bk_ref[...]          # (1,  H)  f32

    H = q.shape[-1]
    S = k.shape[0]
    scale = 1.0 / float(np.sqrt(H))

    # nn.Linear projections: y = x @ W^T + b  (f32 accumulation on the MXU).
    qp = jnp.dot(q, wq_t, preferred_element_type=jnp.float32) + bq   # (tq, H)
    kp = jnp.dot(k, wk_t, preferred_element_type=jnp.float32) + bk   # (S,  H)

    qp_c = qp.astype(cd)
    kp_c = kp.astype(cd)
    dims_nt = (((1,), (1,)), ((), ()))   # contract last dims (no kp.T materialized)

    s_p = lax.dot_general(qp_c, kp_c, dims_nt,
                          preferred_element_type=jnp.float32) * scale      # (tq, S)

    # Algebraic "-q" branch:  Wq(-q)+b = 2*b - (Wq(q)+b)
    #   => s_n = 2*scale*(b @ Kp^T) - s_p      (broadcasted (1, S) row)
    b_row = lax.dot_general(bq.astype(cd), kp_c, dims_nt,
                            preferred_element_type=jnp.float32)            # (1, S)
    s_n = (2.0 * scale) * b_row - s_p

    # --- mask: key padding (additive) + cls/sep rectangles (rebuilt in-kernel)
    row = qi * tq + lax.broadcasted_iota(jnp.int32, (q.shape[0], S), 0)
    col = lax.broadcasted_iota(jnp.int32, (q.shape[0], S), 1)
    i0 = cls_ref[b, 0]
    i1 = cls_ref[b, 1]
    if n_sep == 3:
        i2 = cls_ref[b, 2]
        extra = (((row == i1) & (((col >= i1 + 1) & (col <= i2)) | (col == 0)))
                 | ((row == i2) & (((col >= i0 + 1) & (col <= i1)) | (col == 0))))
    else:
        i2 = cls_ref[b, 2]
        i3 = cls_ref[b, 3]
        extra = (((row == i1) & (((col >= i1 + 1) & (col <= i3)) | (col == 0)))
                 | ((row == i3) & (((col >= i0 + 1) & (col <= i2)) | (col == 0))))

    approx = cd == jnp.bfloat16   # keep exact reciprocal on the f32 path

    def softmax_av(s):
        s = s + kpb                        # additive key-padding bias
        s = jnp.where(extra, NEG, s)       # cls/sep mask
        m = jnp.max(s, axis=-1, keepdims=True)
        e = jnp.exp(s - m)
        denom = jnp.sum(e, axis=-1, keepdims=True)
        w = e * pl.reciprocal(denom, approx=approx)
        o = jnp.dot(w.astype(cd), v, preferred_element_type=jnp.float32)
        return o, w

    o_p, w_p = softmax_av(s_p)
    o_n, w_n = softmax_av(s_n)
    if need_weights:
        return o_p, o_n, w_p, w_n
    return o_p, o_n, None, None


def _waio_kernel_full(cls_ref, q_ref, k_ref, v_ref, kpb_ref,
                      wq_ref, bq_ref, wk_ref, bk_ref,
                      state_ref, state_o_ref, w_ref, w_o_ref,
                      *, n_sep, tq, compute_dtype):
    o_p, o_n, w_p, w_n = _attention_core(
        cls_ref, q_ref, k_ref, v_ref, kpb_ref, wq_ref, bq_ref, wk_ref, bk_ref,
        n_sep=n_sep, tq=tq, compute_dtype=compute_dtype, need_weights=True)
    state_ref[...] = o_p.astype(state_ref.dtype)
    state_o_ref[...] = o_n.astype(state_o_ref.dtype)
    w_ref[...] = w_p.astype(w_ref.dtype)
    w_o_ref[...] = w_n.astype(w_o_ref.dtype)


def _waio_kernel_state_only(cls_ref, q_ref, k_ref, v_ref, kpb_ref,
                            wq_ref, bq_ref, wk_ref, bk_ref,
                            state_ref, state_o_ref,
                            *, n_sep, tq, compute_dtype):
    o_p, o_n, _, _ = _attention_core(
        cls_ref, q_ref, k_ref, v_ref, kpb_ref, wq_ref, bq_ref, wk_ref, bk_ref,
        n_sep=n_sep, tq=tq, compute_dtype=compute_dtype, need_weights=False)
    state_ref[...] = o_p.astype(state_ref.dtype)
    state_o_ref[...] = o_n.astype(state_o_ref.dtype)


# ---------------------------------------------------------------------------
# Wrapper
# ---------------------------------------------------------------------------
def _pick_tq(S):
    if S <= 256:
        return S
    for t in (256, 128):
        if S % t == 0:
            return t
    return S


def waio_forward(queries, keys, values, key_padding_mask, cls_sep_idxs,
                 wq, bq, wk, bk, need_weights=False,
                 compute_dtype=jnp.float32, out_dtype=None):
    B, S, H = queries.shape
    out_dtype = queries.dtype if out_dtype is None else out_dtype
    n_sep = int(cls_sep_idxs.shape[1])
    tq = _pick_tq(S)
    n_qt = S // tq
    cd = compute_dtype

    # MXU operands in compute dtype (bf16 halves DMA bytes too); biases stay f32.
    q_c = queries.astype(cd)
    k_c = keys.astype(cd)
    v_c = values.astype(cd)
    wq_t = wq.T.astype(cd)
    wk_t = wk.T.astype(cd)
    bq2 = bq.reshape(1, H).astype(jnp.float32)
    bk2 = bk.reshape(1, H).astype(jnp.float32)
    # Key-padding mask as an additive (B,1,S) f32 bias — no dense (B,S,S) mask in HBM.
    kpb = jnp.where(key_padding_mask, jnp.float32(NEG),
                    jnp.float32(0.0)).reshape(B, 1, S)
    cls = cls_sep_idxs.astype(jnp.int32)

    q_spec = pl.BlockSpec((None, tq, H), lambda b, qi, c: (b, qi, 0))
    kv_spec = pl.BlockSpec((None, S, H), lambda b, qi, c: (b, 0, 0))
    kpb_spec = pl.BlockSpec((None, 1, S), lambda b, qi, c: (b, 0, 0))
    whh_spec = pl.BlockSpec((H, H), lambda b, qi, c: (0, 0))
    b1h_spec = pl.BlockSpec((1, H), lambda b, qi, c: (0, 0))
    out_sh = pl.BlockSpec((None, tq, H), lambda b, qi, c: (b, qi, 0))
    out_ss = pl.BlockSpec((None, tq, S), lambda b, qi, c: (b, qi, 0))

    cparams = pltpu.CompilerParams(
        dimension_semantics=("parallel", "parallel"),
        vmem_limit_bytes=48 * 1024 * 1024)

    common = dict(n_sep=n_sep, tq=tq, compute_dtype=cd)
    if need_weights:
        kernel = functools.partial(_waio_kernel_full, **common)
        out_shape = (jax.ShapeDtypeStruct((B, S, H), out_dtype),
                     jax.ShapeDtypeStruct((B, S, H), out_dtype),
                     jax.ShapeDtypeStruct((B, S, S), out_dtype),
                     jax.ShapeDtypeStruct((B, S, S), out_dtype))
        out_specs = [out_sh, out_sh, out_ss, out_ss]
    else:
        kernel = functools.partial(_waio_kernel_state_only, **common)
        out_shape = (jax.ShapeDtypeStruct((B, S, H), out_dtype),
                     jax.ShapeDtypeStruct((B, S, H), out_dtype))
        out_specs = [out_sh, out_sh]

    outs = pl.pallas_call(
        kernel,
        out_shape=out_shape,
        grid_spec=pltpu.PrefetchScalarGridSpec(
            num_scalar_prefetch=1,
            grid=(B, n_qt),
            in_specs=[q_spec, kv_spec, kv_spec, kpb_spec,
                      whh_spec, b1h_spec, whh_spec, b1h_spec],
            out_specs=out_specs),
        compiler_params=cparams,
    )(cls, q_c, k_c, v_c, kpb, wq_t, bq2, wk_t, bk2)

    if need_weights:
        return outs
    return outs[0], outs[1], None, None


# ---------------------------------------------------------------------------
# Pure-JAX reference (faithful to the PyTorch module, need_para=True)
# ---------------------------------------------------------------------------
def _build_mask_ref(key_padding_mask, cls_sep_idxs, S):
    B = key_padding_mask.shape[0]
    base = jnp.broadcast_to(key_padding_mask[:, None, :], (B, S, S))
    rows = jnp.arange(S)[None, :, None]
    cols = jnp.arange(S)[None, None, :]
    i0 = cls_sep_idxs[:, 0][:, None, None]
    i1 = cls_sep_idxs[:, 1][:, None, None]
    if cls_sep_idxs.shape[1] == 3:
        i2 = cls_sep_idxs[:, 2][:, None, None]
        extra = (((rows == i1) & (((cols >= i1 + 1) & (cols <= i2)) | (cols == 0)))
                 | ((rows == i2) & (((cols >= i0 + 1) & (cols <= i1)) | (cols == 0))))
    else:
        i2 = cls_sep_idxs[:, 2][:, None, None]
        i3 = cls_sep_idxs[:, 3][:, None, None]
        extra = (((rows == i1) & (((cols >= i1 + 1) & (cols <= i3)) | (cols == 0)))
                 | ((rows == i3) & (((cols >= i0 + 1) & (cols <= i2)) | (cols == 0))))
    return base | extra


def waio_reference(queries, keys, values, key_padding_mask, cls_sep_idxs,
                   wq, bq, wk, bk):
    B, S, H = queries.shape
    mask = _build_mask_ref(key_padding_mask, cls_sep_idxs, S)
    qp = queries @ wq.T + bq
    qn = (-queries) @ wq.T + bq
    kp = keys @ wk.T + bk

    def att(qx):
        s = jnp.einsum('bqh,bkh->bqk', qx, kp) / jnp.sqrt(jnp.float32(H))
        s = jnp.where(mask, -jnp.inf, s)
        w = jax.nn.softmax(s, axis=-1)
        return jnp.einsum('bqk,bkh->bqh', w, values), w

    o_p, w_p = att(qp)
    o_n, w_n = att(qn)
    return o_p, o_n, w_p, w_n


# ---------------------------------------------------------------------------
# Demo / self-test
# ---------------------------------------------------------------------------
if __name__ == "__main__":
    B, S, H = 2, 8, 32
    key = jax.random.PRNGKey(0)
    kq, kk, kv, kwq, kbq, kwk, kbk = jax.random.split(key, 7)

    queries = jax.random.normal(kq, (B, S, H), dtype=jnp.float32)
    keys = jax.random.normal(kk, (B, S, H), dtype=jnp.float32)
    values = jax.random.normal(kv, (B, S, H), dtype=jnp.float32)

    wq = jax.random.normal(kwq, (H, H), dtype=jnp.float32) * 0.05
    bq = jax.random.normal(kbq, (H,), dtype=jnp.float32) * 0.05
    wk = jax.random.normal(kwk, (H, H), dtype=jnp.float32) * 0.05
    bk = jax.random.normal(kbk, (H,), dtype=jnp.float32) * 0.05

    # batch 0 uses all 8 tokens, batch 1 pads the last 2
    lengths = jnp.array([8, 6], dtype=jnp.int32)
    key_padding_mask = jnp.arange(S)[None, :] >= lengths[:, None]   # (B, S) bool
    cls_sep_idxs = jnp.array([[0, 3, 7],
                              [0, 2, 5]], dtype=jnp.int32)          # 3-column case

    r_state, r_state_o, r_w, r_w_o = waio_reference(
        queries, keys, values, key_padding_mask, cls_sep_idxs, wq, bq, wk, bk)

    # --- f32 path with weights: tight correctness check -------------------
    state, state_o, w, w_o = waio_forward(
        queries, keys, values, key_padding_mask, cls_sep_idxs,
        wq, bq, wk, bk, need_weights=True, compute_dtype=jnp.float32)
    jax.block_until_ready((state, state_o, w, w_o))

    np.testing.assert_allclose(np.asarray(state), np.asarray(r_state), rtol=1e-5, atol=1e-5)
    np.testing.assert_allclose(np.asarray(state_o), np.asarray(r_state_o), rtol=1e-5, atol=1e-5)
    np.testing.assert_allclose(np.asarray(w), np.asarray(r_w), rtol=1e-5, atol=1e-5)
    np.testing.assert_allclose(np.asarray(w_o), np.asarray(r_w_o), rtol=1e-5, atol=1e-5)

    # --- bf16 fast path, no weight writeback: loose check ------------------
    state_b, state_ob, w_none, w_o_none = waio_forward(
        queries, keys, values, key_padding_mask, cls_sep_idxs,
        wq, bq, wk, bk, need_weights=False, compute_dtype=jnp.bfloat16)
    jax.block_until_ready((state_b, state_ob))
    assert w_none is None and w_o_none is None

    np.testing.assert_allclose(np.asarray(state_b), np.asarray(r_state), rtol=5e-2, atol=5e-2)
    np.testing.assert_allclose(np.asarray(state_ob), np.asarray(r_state_o), rtol=5e-2, atol=5e-2)

    print("KERNEL_OK")
</pallas_src>

<mosaic_0001>
module attributes {stable_mosaic.version = 11 : i64} {
  func.func @_waio_kernel_full(%arg0: i32, %arg1: i32, %arg2: memref<2x3xi32, #tpu.memory_space<smem>>, %arg3: memref<1x8x32xf32, #tpu.memory_space<vmem>>, %arg4: memref<1x8x32xf32, #tpu.memory_space<vmem>>, %arg5: memref<1x8x32xf32, #tpu.memory_space<vmem>>, %arg6: memref<1x1x8xf32, #tpu.memory_space<vmem>>, %arg7: memref<32x32xf32, #tpu.memory_space<vmem>>, %arg8: memref<1x32xf32, #tpu.memory_space<vmem>>, %arg9: memref<32x32xf32, #tpu.memory_space<vmem>>, %arg10: memref<1x32xf32, #tpu.memory_space<vmem>>, %arg11: memref<1x8x32xf32, #tpu.memory_space<vmem>>, %arg12: memref<1x8x32xf32, #tpu.memory_space<vmem>>, %arg13: memref<1x8x8xf32, #tpu.memory_space<vmem>>, %arg14: memref<1x8x8xf32, #tpu.memory_space<vmem>>) attributes {dimension_semantics = [#tpu.dimension_semantics<parallel>, #tpu.dimension_semantics<parallel>], iteration_bounds = array<i64: 2, 1>, scalar_prefetch = 1 : i64, scratch_operands = 0 : i64, tpu.core_type = #tpu.core_type<tc>, window_params = [{transform_indices = @transform_0, window_bounds = array<i64: 1, 8, 32>}, {transform_indices = @transform_1, window_bounds = array<i64: 1, 8, 32>}, {transform_indices = @transform_2, window_bounds = array<i64: 1, 8, 32>}, {transform_indices = @transform_3, window_bounds = array<i64: 1, 1, 8>}, {pipeline_mode = #tpu.pipeline_mode<synchronous>, transform_indices = @transform_4, window_bounds = array<i64: 32, 32>}, {pipeline_mode = #tpu.pipeline_mode<synchronous>, transform_indices = @transform_5, window_bounds = array<i64: 1, 32>}, {pipeline_mode = #tpu.pipeline_mode<synchronous>, transform_indices = @transform_6, window_bounds = array<i64: 32, 32>}, {pipeline_mode = #tpu.pipeline_mode<synchronous>, transform_indices = @transform_7, window_bounds = array<i64: 1, 32>}, {transform_indices = @transform_8, window_bounds = array<i64: 1, 8, 32>}, {transform_indices = @transform_9, window_bounds = array<i64: 1, 8, 32>}, {transform_indices = @transform_10, window_bounds = array<i64: 1, 8, 8>}, {transform_indices = @transform_11, window_bounds = array<i64: 1, 8, 8>}]} {
    %c0 = arith.constant 0 : index
    %c0_0 = arith.constant 0 : index
    %c0_1 = arith.constant 0 : index
    %0 = vector.load %arg3[%c0, %c0_0, %c0_1] : memref<1x8x32xf32, #tpu.memory_space<vmem>>, vector<1x8x32xf32>
    %1 = vector.shape_cast %0 : vector<1x8x32xf32> to vector<8x32xf32>
    %c0_2 = arith.constant 0 : index
    %c0_3 = arith.constant 0 : index
    %c0_4 = arith.constant 0 : index
    %2 = vector.load %arg4[%c0_2, %c0_3, %c0_4] : memref<1x8x32xf32, #tpu.memory_space<vmem>>, vector<1x8x32xf32>
    %3 = vector.shape_cast %2 : vector<1x8x32xf32> to vector<8x32xf32>
    %c0_5 = arith.constant 0 : index
    %c0_6 = arith.constant 0 : index
    %c0_7 = arith.constant 0 : index
    %4 = vector.load %arg5[%c0_5, %c0_6, %c0_7] : memref<1x8x32xf32, #tpu.memory_space<vmem>>, vector<1x8x32xf32>
    %5 = vector.shape_cast %4 : vector<1x8x32xf32> to vector<8x32xf32>
    %c0_8 = arith.constant 0 : index
    %c0_9 = arith.constant 0 : index
    %c0_10 = arith.constant 0 : index
    %6 = vector.load %arg6[%c0_8, %c0_9, %c0_10] : memref<1x1x8xf32, #tpu.memory_space<vmem>>, vector<1x1x8xf32>
    %7 = vector.shape_cast %6 : vector<1x1x8xf32> to vector<1x8xf32>
    %c0_11 = arith.constant 0 : index
    %c0_12 = arith.constant 0 : index
    %8 = vector.load %arg7[%c0_11, %c0_12] : memref<32x32xf32, #tpu.memory_space<vmem>>, vector<32x32xf32>
    %c0_13 = arith.constant 0 : index
    %c0_14 = arith.constant 0 : index
    %9 = vector.load %arg9[%c0_13, %c0_14] : memref<32x32xf32, #tpu.memory_space<vmem>>, vector<32x32xf32>
    %c0_15 = arith.constant 0 : index
    %c0_16 = arith.constant 0 : index
    %10 = vector.load %arg8[%c0_15, %c0_16] : memref<1x32xf32, #tpu.memory_space<vmem>>, vector<1x32xf32>
    %c0_17 = arith.constant 0 : index
    %c0_18 = arith.constant 0 : index
    %11 = vector.load %arg10[%c0_17, %c0_18] : memref<1x32xf32, #tpu.memory_space<vmem>>, vector<1x32xf32>
    %cst = arith.constant dense<0.000000e+00> : vector<8x32xf32>
    %12 = tpu.matmul %1, %8, %cst {dimension_numbers = #tpu.dot_dimension_numbers<[1], [0], [0], [1], [0, 0, 1, 1], [], []>} : vector<8x32xf32>, vector<32x32xf32>, vector<8x32xf32> -> vector<8x32xf32>
    %13 = vector.broadcast %10 : vector<1x32xf32> to vector<8x32xf32>
    %14 = arith.addf %12, %13 : vector<8x32xf32>
    %cst_19 = arith.constant dense<0.000000e+00> : vector<8x32xf32>
    %15 = tpu.matmul %3, %9, %cst_19 {dimension_numbers = #tpu.dot_dimension_numbers<[1], [0], [0], [1], [0, 0, 1, 1], [], []>} : vector<8x32xf32>, vector<32x32xf32>, vector<8x32xf32> -> vector<8x32xf32>
    %16 = vector.broadcast %11 : vector<1x32xf32> to vector<8x32xf32>
    %17 = arith.addf %15, %16 : vector<8x32xf32>
    %cst_20 = arith.constant dense<0.000000e+00> : vector<8x8xf32>
    %18 = tpu.matmul %14, %17, %cst_20 {dimension_numbers = #tpu.dot_dimension_numbers<[1], [1], [0], [0], [0, 0, 1, 0], [], []>} : vector<8x32xf32>, vector<8x32xf32>, vector<8x8xf32> -> vector<8x8xf32>
    %cst_21 = arith.constant 0.176776692 : f32
    %19 = vector.broadcast %cst_21 : f32 to vector<8x8xf32>
    %20 = arith.mulf %18, %19 : vector<8x8xf32>
    %cst_22 = arith.constant dense<0.000000e+00> : vector<1x8xf32>
    %21 = tpu.matmul %10, %17, %cst_22 {dimension_numbers = #tpu.dot_dimension_numbers<[1], [1], [0], [0], [0, 0, 1, 0], [], []>} : vector<1x32xf32>, vector<8x32xf32>, vector<1x8xf32> -> vector<1x8xf32>
    %cst_23 = arith.constant 0.353553385 : f32
    %22 = vector.broadcast %cst_23 : f32 to vector<1x8xf32>
    %23 = arith.mulf %22, %21 : vector<1x8xf32>
    %24 = vector.broadcast %23 : vector<1x8xf32> to vector<8x8xf32>
    %25 = arith.subf %24, %20 : vector<8x8xf32>
    %c8_i32 = arith.constant 8 : i32
    %26 = arith.muli %arg1, %c8_i32 : i32
    %27 = tpu.iota {dimensions = array<i32: 0>} : vector<8x8xi32>
    %28 = vector.broadcast %26 : i32 to vector<8x8xi32>
    %29 = arith.addi %28, %27 : vector<8x8xi32>
    %30 = tpu.iota {dimensions = array<i32: 1>} : vector<8x8xi32>
    %31 = arith.index_cast %arg0 : i32 to index
    %c0_24 = arith.constant 0 : index
    %32 = memref.load %arg2[%31, %c0_24] : memref<2x3xi32, #tpu.memory_space<smem>>
    %33 = arith.index_cast %arg0 : i32 to index
    %c1 = arith.constant 1 : index
    %34 = memref.load %arg2[%33, %c1] : memref<2x3xi32, #tpu.memory_space<smem>>
    %35 = arith.index_cast %arg0 : i32 to index
    %c2 = arith.constant 2 : index
    %36 = memref.load %arg2[%35, %c2] : memref<2x3xi32, #tpu.memory_space<smem>>
    %37 = vector.broadcast %34 : i32 to vector<8x8xi32>
    %38 = arith.cmpi eq, %29, %37 : vector<8x8xi32>
    %c1_i32 = arith.constant 1 : i32
    %39 = arith.addi %34, %c1_i32 : i32
    %40 = vector.broadcast %39 : i32 to vector<8x8xi32>
    %41 = arith.cmpi sge, %30, %40 : vector<8x8xi32>
    %42 = vector.broadcast %36 : i32 to vector<8x8xi32>
    %43 = arith.cmpi sle, %30, %42 : vector<8x8xi32>
    %44 = arith.andi %41, %43 : vector<8x8xi1>
    %c0_i32 = arith.constant 0 : i32
    %45 = vector.broadcast %c0_i32 : i32 to vector<8x8xi32>
    %46 = arith.cmpi eq, %30, %45 : vector<8x8xi32>
    %47 = arith.ori %44, %46 : vector<8x8xi1>
    %48 = arith.andi %38, %47 : vector<8x8xi1>
    %49 = vector.broadcast %36 : i32 to vector<8x8xi32>
    %50 = arith.cmpi eq, %29, %49 : vector<8x8xi32>
    %c1_i32_25 = arith.constant 1 : i32
    %51 = arith.addi %32, %c1_i32_25 : i32
    %52 = vector.broadcast %51 : i32 to vector<8x8xi32>
    %53 = arith.cmpi sge, %30, %52 : vector<8x8xi32>
    %54 = vector.broadcast %34 : i32 to vector<8x8xi32>
    %55 = arith.cmpi sle, %30, %54 : vector<8x8xi32>
    %56 = arith.andi %53, %55 : vector<8x8xi1>
    %c0_i32_26 = arith.constant 0 : i32
    %57 = vector.broadcast %c0_i32_26 : i32 to vector<8x8xi32>
    %58 = arith.cmpi eq, %30, %57 : vector<8x8xi32>
    %59 = arith.ori %56, %58 : vector<8x8xi1>
    %60 = arith.andi %50, %59 : vector<8x8xi1>
    %61 = arith.ori %48, %60 : vector<8x8xi1>
    %62 = vector.broadcast %7 : vector<1x8xf32> to vector<8x8xf32>
    %63 = arith.addf %20, %62 : vector<8x8xf32>
    %cst_27 = arith.constant -1.000000e+30 : f32
    %64 = vector.broadcast %cst_27 : f32 to vector<8x8xf32>
    %65 = arith.select %61, %64, %63 : vector<8x8xi1>, vector<8x8xf32>
    %cst_28 = arith.constant dense<0xFF800000> : vector<8xf32>
    %66 = vector.multi_reduction <maximumf>, %65, %cst_28 [1] : vector<8x8xf32> to vector<8xf32>
    %67 = vector.shape_cast %66 : vector<8xf32> to vector<8x1xf32>
    %68 = vector.broadcast %67 : vector<8x1xf32> to vector<8x8xf32>
    %69 = arith.subf %65, %68 : vector<8x8xf32>
    %70 = math.exp %69 : vector<8x8xf32>
    %cst_29 = arith.constant dense<0.000000e+00> : vector<8xf32>
    %71 = vector.multi_reduction <add>, %70, %cst_29 [1] : vector<8x8xf32> to vector<8xf32>
    %72 = vector.shape_cast %71 : vector<8xf32> to vector<8x1xf32>
    %73 = tpu.reciprocal %72 : vector<8x1xf32> -> vector<8x1xf32>
    %74 = vector.broadcast %73 : vector<8x1xf32> to vector<8x8xf32>
    %75 = arith.mulf %70, %74 : vector<8x8xf32>
    %cst_30 = arith.constant dense<0.000000e+00> : vector<8x32xf32>
    %76 = tpu.matmul %75, %5, %cst_30 {dimension_numbers = #tpu.dot_dimension_numbers<[1], [0], [0], [1], [0, 0, 1, 1], [], []>} : vector<8x8xf32>, vector<8x32xf32>, vector<8x32xf32> -> vector<8x32xf32>
    %77 = vector.broadcast %7 : vector<1x8xf32> to vector<8x8xf32>
    %78 = arith.addf %25, %77 : vector<8x8xf32>
    %cst_31 = arith.constant -1.000000e+30 : f32
    %79 = vector.broadcast %cst_31 : f32 to vector<8x8xf32>
    %80 = arith.select %61, %79, %78 : vector<8x8xi1>, vector<8x8xf32>
    %cst_32 = arith.constant dense<0xFF800000> : vector<8xf32>
    %81 = vector.multi_reduction <maximumf>, %80, %cst_32 [1] : vector<8x8xf32> to vector<8xf32>
    %82 = vector.shape_cast %81 : vector<8xf32> to vector<8x1xf32>
    %83 = vector.broadcast %82 : vector<8x1xf32> to vector<8x8xf32>
    %84 = arith.subf %80, %83 : vector<8x8xf32>
    %85 = math.exp %84 : vector<8x8xf32>
    %cst_33 = arith.constant dense<0.000000e+00> : vector<8xf32>
    %86 = vector.multi_reduction <add>, %85, %cst_33 [1] : vector<8x8xf32> to vector<8xf32>
    %87 = vector.shape_cast %86 : vector<8xf32> to vector<8x1xf32>
    %88 = tpu.reciprocal %87 : vector<8x1xf32> -> vector<8x1xf32>
    %89 = vector.broadcast %88 : vector<8x1xf32> to vector<8x8xf32>
    %90 = arith.mulf %85, %89 : vector<8x8xf32>
    %cst_34 = arith.constant dense<0.000000e+00> : vector<8x32xf32>
    %91 = tpu.matmul %90, %5, %cst_34 {dimension_numbers = #tpu.dot_dimension_numbers<[1], [0], [0], [1], [0, 0, 1, 1], [], []>} : vector<8x8xf32>, vector<8x32xf32>, vector<8x32xf32> -> vector<8x32xf32>
    %c0_35 = arith.constant 0 : index
    %c0_36 = arith.constant 0 : index
    %c0_37 = arith.constant 0 : index
    %92 = vector.load %arg11[%c0_35, %c0_36, %c0_37] : memref<1x8x32xf32, #tpu.memory_space<vmem>>, vector<1x8x32xf32>
    %93 = vector.shape_cast %92 : vector<1x8x32xf32> to vector<8x32xf32>
    %94 = vector.shape_cast %76 : vector<8x32xf32> to vector<1x8x32xf32>
    tpu.vector_store %arg11[%c0_35, %c0_36, %c0_37], %94 {strides = array<i32>} : memref<1x8x32xf32, #tpu.memory_space<vmem>>, vector<1x8x32xf32>,
    %c0_38 = arith.constant 0 : index
    %c0_39 = arith.constant 0 : index
    %c0_40 = arith.constant 0 : index
    %95 = vector.load %arg12[%c0_38, %c0_39, %c0_40] : memref<1x8x32xf32, #tpu.memory_space<vmem>>, vector<1x8x32xf32>
    %96 = vector.shape_cast %95 : vector<1x8x32xf32> to vector<8x32xf32>
    %97 = vector.shape_cast %91 : vector<8x32xf32> to vector<1x8x32xf32>
    tpu.vector_store %arg12[%c0_38, %c0_39, %c0_40], %97 {strides = array<i32>} : memref<1x8x32xf32, #tpu.memory_space<vmem>>, vector<1x8x32xf32>,
    %c0_41 = arith.constant 0 : index
    %c0_42 = arith.constant 0 : index
    %c0_43 = arith.constant 0 : index
    %98 = vector.load %arg13[%c0_41, %c0_42, %c0_43] : memref<1x8x8xf32, #tpu.memory_space<vmem>>, vector<1x8x8xf32>
    %99 = vector.shape_cast %98 : vector<1x8x8xf32> to vector<8x8xf32>
    %100 = vector.shape_cast %75 : vector<8x8xf32> to vector<1x8x8xf32>
    tpu.vector_store %arg13[%c0_41, %c0_42, %c0_43], %100 {strides = array<i32>} : memref<1x8x8xf32, #tpu.memory_space<vmem>>, vector<1x8x8xf32>,
    %c0_44 = arith.constant 0 : index
    %c0_45 = arith.constant 0 : index
    %c0_46 = arith.constant 0 : index
    %101 = vector.load %arg14[%c0_44, %c0_45, %c0_46] : memref<1x8x8xf32, #tpu.memory_space<vmem>>, vector<1x8x8xf32>
    %102 = vector.shape_cast %101 : vector<1x8x8xf32> to vector<8x8xf32>
    %103 = vector.shape_cast %90 : vector<8x8xf32> to vector<1x8x8xf32>
    tpu.vector_store %arg14[%c0_44, %c0_45, %c0_46], %103 {strides = array<i32>} : memref<1x8x8xf32, #tpu.memory_space<vmem>>, vector<1x8x8xf32>,
    return
  }
  func.func @transform_0(%arg0: i32, %arg1: i32, %arg2: memref<2x3xi32, #tpu.memory_space<smem>>) -> (i32, i32, i32) {
    %c0_i32 = arith.constant 0 : i32
    %c0_i32_0 = arith.constant 0 : i32
    return %arg0, %arg1, %c0_i32 : i32, i32, i32
  }
  func.func @transform_1(%arg0: i32, %arg1: i32, %arg2: memref<2x3xi32, #tpu.memory_space<smem>>) -> (i32, i32, i32) {
    %c0_i32 = arith.constant 0 : i32
    %c0_i32_0 = arith.constant 0 : i32
    %c0_i32_1 = arith.constant 0 : i32
    return %arg0, %c0_i32, %c0_i32_0 : i32, i32, i32
  }
  func.func @transform_2(%arg0: i32, %arg1: i32, %arg2: memref<2x3xi32, #tpu.memory_space<smem>>) -> (i32, i32, i32) {
    %c0_i32 = arith.constant 0 : i32
    %c0_i32_0 = arith.constant 0 : i32
    %c0_i32_1 = arith.constant 0 : i32
    return %arg0, %c0_i32, %c0_i32_0 : i32, i32, i32
  }
  func.func @transform_3(%arg0: i32, %arg1: i32, %arg2: memref<2x3xi32, #tpu.memory_space<smem>>) -> (i32, i32, i32) {
    %c0_i32 = arith.constant 0 : i32
    %c0_i32_0 = arith.constant 0 : i32
    %c0_i32_1 = arith.constant 0 : i32
    return %arg0, %c0_i32, %c0_i32_0 : i32, i32, i32
  }
  func.func @transform_4(%arg0: i32, %arg1: i32, %arg2: memref<2x3xi32, #tpu.memory_space<smem>>) -> (i32, i32) {
    %c0_i32 = arith.constant 0 : i32
    %c0_i32_0 = arith.constant 0 : i32
    %c0_i32_1 = arith.constant 0 : i32
    return %c0_i32, %c0_i32_0 : i32, i32
  }
  func.func @transform_5(%arg0: i32, %arg1: i32, %arg2: memref<2x3xi32, #tpu.memory_space<smem>>) -> (i32, i32) {
    %c0_i32 = arith.constant 0 : i32
    %c0_i32_0 = arith.constant 0 : i32
    %c0_i32_1 = arith.constant 0 : i32
    return %c0_i32, %c0_i32_0 : i32, i32
  }
  func.func @transform_6(%arg0: i32, %arg1: i32, %arg2: memref<2x3xi32, #tpu.memory_space<smem>>) -> (i32, i32) {
    %c0_i32 = arith.constant 0 : i32
    %c0_i32_0 = arith.constant 0 : i32
    %c0_i32_1 = arith.constant 0 : i32
    return %c0_i32, %c0_i32_0 : i32, i32
  }
  func.func @transform_7(%arg0: i32, %arg1: i32, %arg2: memref<2x3xi32, #tpu.memory_space<smem>>) -> (i32, i32) {
    %c0_i32 = arith.constant 0 : i32
    %c0_i32_0 = arith.constant 0 : i32
    %c0_i32_1 = arith.constant 0 : i32
    return %c0_i32, %c0_i32_0 : i32, i32
  }
  func.func @transform_8(%arg0: i32, %arg1: i32, %arg2: memref<2x3xi32, #tpu.memory_space<smem>>) -> (i32, i32, i32) {
    %c0_i32 = arith.constant 0 : i32
    %c0_i32_0 = arith.constant 0 : i32
    return %arg0, %arg1, %c0_i32 : i32, i32, i32
  }
  func.func @transform_9(%arg0: i32, %arg1: i32, %arg2: memref<2x3xi32, #tpu.memory_space<smem>>) -> (i32, i32, i32) {
    %c0_i32 = arith.constant 0 : i32
    %c0_i32_0 = arith.constant 0 : i32
    return %arg0, %arg1, %c0_i32 : i32, i32, i32
  }
  func.func @transform_10(%arg0: i32, %arg1: i32, %arg2: memref<2x3xi32, #tpu.memory_space<smem>>) -> (i32, i32, i32) {
    %c0_i32 = arith.constant 0 : i32
    %c0_i32_0 = arith.constant 0 : i32
    return %arg0, %arg1, %c0_i32 : i32, i32, i32
  }
  func.func @transform_11(%arg0: i32, %arg1: i32, %arg2: memref<2x3xi32, #tpu.memory_space<smem>>) -> (i32, i32, i32) {
    %c0_i32 = arith.constant 0 : i32
    %c0_i32_0 = arith.constant 0 : i32
    return %arg0, %arg1, %c0_i32 : i32, i32, i32
  }
}

</mosaic_0001>

<bundles_post_ra>
// kernel: tpu_custom_call.1
= control target key start
LH: loop header
LB: loop body
LE: loop exit
PB: predicated region body
PF: predicated region fallthrough
CT: control target
= control target key end

     0   :  { %s2581_s0 = inlined_call_operand.hbm [shape: s32[2,3], index: 0, kind: input, shape index: {}]   ;;  %s2582_s1 = inlined_call_operand.hbm [shape: f32[2,8,32], index: 1, kind: input, shape index: {}]   ;;  %s2583_s2 = inlined_call_operand.hbm [shape: f32[2,8,32], index: 2, kind: input, shape index: {}]   ;;  %s2584_s3 = inlined_call_operand.hbm [shape: f32[2,8,32], index: 3, kind: input, shape index: {}]   ;;  %s2585_s4 = inlined_call_operand.vmem [shape: f32[2,1,8], index: 4, kind: input, shape index: {}]   ;;  %s2586_s5 = inlined_call_operand.hbm [shape: f32[32,32], index: 5, kind: input, shape index: {}]   ;;  %s2587_s6 = inlined_call_operand.vmem [shape: f32[1,32], index: 6, kind: input, shape index: {}]   ;;  %s2588_s7 = inlined_call_operand.hbm [shape: f32[32,32], index: 7, kind: input, shape index: {}]   ;;  %s2589_s8 = inlined_call_operand.vmem [shape: f32[1,32], index: 8, kind: input, shape index: {}]   ;;  %s2590_s9 = inlined_call_operand.hbm [shape: f32[2,8,32], index: 9, kind: output, shape index: {0}]   ;;  %s2591_s10 = inlined_call_operand.hbm [shape: f32[2,8,32], index: 10, kind: output, shape index: {1}]   ;;  %s2592_s11 = inlined_call_operand.hbm [shape: f32[2,8,8], index: 11, kind: output, shape index: {2}]   ;;  %s2593_s12 = inlined_call_operand.hbm [shape: f32[2,8,8], index: 12, kind: output, shape index: {3}]  }
   0x1   :  { %2618 = sst [smem:[#allocation32_spill]] %s2583_s2  ;;  %s1672_s23 = scalar_lea.hbm %s2581_s0, 32 }
   0x2   :  { %2619 = sst [smem:[#allocation33_spill]] %s2586_s5  ;;  %p1673_p0 = scmp.ne.s32.totalorder %s2581_s0, %s1672_s23 }
   0x3   :  { %2620 = sst [smem:[#allocation34_spill]] %s2588_s7  ;;  %p1676_p1 = scmp.lt.u32.totalorder %s1672_s23, %s2581_s0 }
   0x4   :  { %2621 = sst [smem:[#allocation35_spill]] %s2590_s9 }
   0x5   :  { %2622 = sst [smem:[#allocation36_spill]] %s2591_s10  ;;  %p1678_p2 = pnand %p1676_p1, %p1673_p0 }
   0x6   :  { %2623 = sst [smem:[#allocation37_spill]] %s2592_s11 }
   0x7   :  { %1681 = shalt.err (!%p1678_p2)  }
   0x8   :  { %s2014_s28 = smov [#allocation3]  }
   0x9   :  { %19 = dma.hbm_to_smem %s2581_s0, 32, %s2014_s28, [#allocation2] }
   0xa   :  { %1964 = dma.done.wait [#allocation2], 32 }
   0xb   :  { %1965 = vsyncadd [#allocation2], 4294967264 }
   0xc   :  { %21 = sfence }
   0xd   :  { %22 = vsyncpa [#allocation5], 0 }
   0xe   :  { %24 = vsyncpa [#allocation5 + $0x1], 0 }
   0xf   :  { %25 = vsyncpa [#allocation8], 0 }
  0x10   :  { %27 = vsyncpa [#allocation8 + $0x1], 0 }
  0x11   :  { %28 = vsyncpa [#allocation11], 0 }
  0x12   :  { %29 = vsyncpa [#allocation6], 0 }
  0x13   :  { %31 = vsyncpa [#allocation6 + $0x1], 0 }
  0x14   :  { %32 = vsyncpa [#allocation15], 0 }
  0x15   :  { %34 = vsyncpa [#allocation15 + $0x1], 0 }
  0x16   :  { %35 = vsyncpa [#allocation18], 0 }
  0x17   :  { %37 = vsyncpa [#allocation18 + $0x1], 0  ;;  %s2106_s13 = smov 0   ;;  %s2108_s14 = smov 0  }
  0x18   :  { %s2110_s15 = smov 0   ;;  %s2112_s0 = smov 0  }
  0x19   :  { %s2114_s16 = smov 0   ;;  %s2116_s17 = smov 0  }
  0x1a LB: > { %2624 = sst [smem:[#allocation26_spill]] %s1992_s13  ;;  %s2137_s18 = sadd.s32 4294967295, %s2012_s17   ;;  %s2012_s17 = sphi %s2116_s17, %s43_s17   ;;  %s2008_s16 = sphi %s2114_s16, %s2668_s16   ;;  %s2004_s0 = sphi %s2112_s0, %s2667_s0   ;;  %s2000_s15 = sphi %s2110_s15, %s2671_s15   ;;  %s1996_s14 = sphi %s2108_s14, %s2670_s14   ;;  %s1992_s13 = sphi %s2106_s13, %s2669_s13  }
  0x1b   : > { %2625 = sst [smem:[#allocation27_spill]] %s2008_s16  ;;  %s2594_s19 = sadd.s32 4294967294, %s2012_s17  }
  0x1c   : > { %2626 = sst [smem:[#allocation28_spill]] %s2012_s17  ;;  %p77_p3 = scmp.ne.s32.totalorder %s1996_s14, %s1992_s13 }
  0x1d   : > { %p2597_p4 = scmp.eq.s32.totalorder %s2137_s18, 0  ;;  %p271_p6 = scmp.eq.s32.totalorder %s2594_s19, 1 }
  0x1e   : > { %p1437_p8 = scmp.ge.s32.totalorder %s2012_s17, 1  ;;  %p362_p10 = scmp.lt.s32.totalorder %s2012_s17, 3 }
  0x1f   : > { %p2148_p7 = por %p2597_p4, %p77_p3  ;;  %p2153_p9 = por %p271_p6, %p77_p3 }
  0x20   : > { %p2158_p11 = pnand %p1437_p8, %p362_p10  ;;  %s2015_s23 = smov [#allocation10]  }
  0x21   : > { %s2627_s20 = scalar_select %p2148_p7, 1, 0 }
  0x22   : > { %s2628_s21 = scalar_select %p2153_p9, 1, 0 }
  0x23   : > { %s2630_s22 = scalar_select %p2158_p11, 1, 0 }
  0x24   : > { %2629 = sst [smem:[#allocation29_spill]] %s2628_s21  ;;  %s374_s24 = sshll.u32 %s2015_s23, 4  ;;  %s375_s24 = int_to_ptr.vmem [resolvable:$true] %s374_s24 }
  0x25   : > { %p1572_p12 = pneg %p2158_p11  ;;  %s55_s26 = sadd.s32 1, %s2008_s16 }
  0x26   : > { %s2632_s5 = sld [smem:[#allocation33_spill]] }
  0x27   : > { %p2167_p0 = pnand %p1572_p12, %p2597_p4 }
  0x29   : > { %s2631_s25 = scalar_select %p2167_p0, 1, 0 }
  0x2a   : > { %p2610_p2 = pneg %p2167_p0 }
  0x2c   : > { %s1682_s29 = scalar_lea.hbm %s2632_s5, 512 }
  0x2d   : > { %p1683_p1 = scmp.ne.s32.totalorder %s2632_s5, %s1682_s29  ;;  %p1689_p8 = scmp.lt.u32.totalorder %s1682_s29, %s2632_s5 }
  0x2f   : > { %p1685_p3 = pnand %p2610_p2, %p1683_p1 }
  0x31   : > { %p1686_p6 = pneg %p1685_p3 }
  0x33   : > { %p1691_p10 = pnand %p1689_p8, %p1686_p6 }
  0x35   : > { %1694 = shalt.err (!%p1691_p10)
}
  0x36   : > { %s1695_s13 = scalar_lea.vmem %s375_s24, 512  ;;  %p1703_p5 = scmp.lt.s32.totalorder %s375_s24, %s375_s24 }
  0x37   : > { %p1696_p12 = scmp.ne.s32.totalorder %s375_s24, %s1695_s13  ;;  %p1704_p9 = scmp.lt.s32.totalorder %s1695_s13, %s1695_s13 }
  0x39   : > { %p1698_p13 = pnand %p1696_p12, %p2610_p2  ;;  %p1705_p7 = por %p1704_p9, %p1703_p5 }
  0x3b   : > { %p1699_p4 = pneg %p1698_p13 }
  0x3d   : > { %p1706_p11 = pnand %p1705_p7, %p1699_p4 }
  0x3f   : > { %1709 = shalt.err (!%p1706_p11)
}
  0x40   : > { %s2600_s19 = smov 128   ;;  %s2601_s21 = smov 8  }
  0x41   : > { %1575 = dma.hbm_to_vmem [thread:$0]  (!%p2167_p0), %s2632_s5, 512, %s375_s24, [#allocation11], %s2600_s19, %s2600_s19, %s2601_s21  }
  0x42   : > { %p57_p4 = scmp.ge.s32.totalorder %s55_s26, 2  ;;  %s64_s28 = sadd.s32 1, %s2000_s15 }
  0x43   : > { %p71_p5 = scmp.ne.s32.totalorder %s2000_s15, %s1996_s14  ;;  %p72_p7 = scmp.eq.s32.totalorder %s2012_s17, 0 }
  0x44   : > { %s2673_s26 = smov (%p57_p4, %s55_s26), 0  ;;  %p2634_p11 = scmp.eq.s32.totalorder %s2137_s18, 1 }
  0x45   : > { %2633 = sst [smem:[#allocation30_spill]] %s2673_s26  ;;  %p73_p9 = por %p72_p7, %p71_p5 }
  0x46   : > { %p2205_p13 = por %p2634_p11, %p71_p5  ;;  %s59_s30 = ssub.s32 %s2008_s16, %s2673_s26 }
  0x47   : > { %p1604_p1 = scmp.lt.s32.totalorder %s2012_s17, 2  ;;  %p62_p3 = scmp.eq.s32.totalorder %s59_s30, 0 }
  0x48   : > { %s2635_s29 = scalar_select %p2205_p13, 1, 0 }
  0x49   : > { %s2603_s23 = sand.u32 1, %s2000_s15   ;;  %s2218_s13 = sshll.u32 %s2008_s16, 7 }
  0x4a   : > { %s2215_s24 = sshll.u32 %s2603_s23, 3  ;;  %p2223_p6 = pnand %p1604_p1, %p73_p9 }
  0x4b   : > { %s2221_s27 = scalar_select %p62_p3, %s2000_s15, %s64_s28  }
  0x4c   : > { %s2637_s19 = scalar_select %p2223_p6, 1, 0 }
  0x4d   : > { %2636 = sst [smem:[#allocation31_spill]] %s2221_s27  ;;  %s426_s21 = sand.u32 1, %s2012_s17  }
  0x4e   : > { %s2638_s2 = sld [smem:[#allocation32_spill]]  ;;  %s430_s23 = scalar_lea.vmem [#allocation7], %s2215_s24 }
  0x4f   : > { %s437_s16 = sshll.u32 %s430_s23, 4  ;;  %s2018_s28 = smov [#allocation12]   ;;  %s2235_s16 = int_to_ptr.vmem [resolvable:$true] %s437_s16 }
  0x50   : > { %s2237_s27 = sshll.u32 %s2018_s28, 4  ;;  %s2239_s9 = scalar_lea.sflag [#allocation8], %s426_s21  ;;  %s391_s27 = int_to_ptr.vmem [resolvable:$true] %s2237_s27 }
  0x51   : > { %p2245_p10 = pneg %p2223_p6 }
  0x53   : > { %s2639_s5 = scalar_select %p2245_p10, 1, 0 }
  0x54   : > { %s2232_s30 = scalar_lea.hbm %s2638_s2, %s2218_s13  ;;  %s1715_s17 = scalar_lea.hbm %s2638_s2, 256 }
  0x55   : > { %s1710_s11 = scalar_lea.hbm %s2232_s30, 128  ;;  %p1716_p5 = scmp.lt.u32.totalorder %s2232_s30, %s2638_s2 }
  0x56   : > { %p1711_p8 = scmp.ne.s32.totalorder %s2232_s30, %s1710_s11  ;;  %p1717_p7 = scmp.lt.u32.totalorder %s1715_s17, %s1710_s11 }
  0x57   : > { %p1719_p11 = scmp.lt.u32.totalorder %s1710_s11, %s2232_s30 }
  0x58   : > { %p1713_p12 = pnand %p2245_p10, %p1711_p8  ;;  %p1718_p9 = por %p1717_p7, %p1716_p5 }
  0x5a   : > { %p1714_p4 = pneg %p1713_p12  ;;  %p1720_p1 = por %p1719_p11, %p1718_p9 }
  0x5c   : > { %p1721_p3 = pnand %p1720_p1, %p1714_p4 }
  0x5e   : > { %1724 = shalt.err (!%p1721_p3)
}
  0x5f   : > { %s1725_s21 = scalar_lea.vmem %s2235_s16, 128  ;;  %s2019_s26 = smov [#allocation7]  }
  0x60   : > { %p1726_p8 = scmp.ne.s32.totalorder %s2235_s16, %s1725_s21  ;;  %s1730_s23 = sshll.u32 %s2019_s26, 4  ;;  %s1731_s23 = int_to_ptr.vmem [resolvable:$false] %s1730_s23 }
  0x61   : > { %s1732_s10 = scalar_lea.vmem %s1731_s23, 256  ;;  %p1733_p13 = scmp.lt.s32.totalorder %s2235_s16, %s1731_s23 }
  0x62   : > { %p1728_p12 = pnand %p1726_p8, %p2245_p10  ;;  %p1734_p0 = scmp.lt.s32.totalorder %s1732_s10, %s1725_s21 }
  0x64   : > { %p1729_p2 = pneg %p1728_p12  ;;  %p1735_p5 = por %p1734_p0, %p1733_p13 }
  0x66   : > { %p1736_p7 = pnand %p1735_p5, %p1729_p2 }
  0x68   : > { %1739 = shalt.err (!%p1736_p7)
}
  0x69   : > { %1585 = dma.hbm_to_vmem [thread:$0]  (!%p2223_p6), %s2232_s30, 128, %s2235_s16, %s2239_s9  }
  0x6a   : > { %s2640_s7 = sld [smem:[#allocation34_spill]]  ;;  %p2641_p0 = scmp.ne.s32.totalorder %s2631_s25, 0 }
  0x6c   : > { %p2642_p2 = pneg %p2641_p0 }
  0x70   : > { %s1740_s28 = scalar_lea.hbm %s2640_s7, 512 }
  0x71   : > { %p1741_p4 = scmp.ne.s32.totalorder %s2640_s7, %s1740_s28  ;;  %p1747_p11 = scmp.lt.u32.totalorder %s1740_s28, %s2640_s7 }
  0x73   : > { %p1743_p13 = pnand %p1741_p4, %p2642_p2 }
  0x75   : > { %p1744_p9 = pneg %p1743_p13 }
  0x77   : > { %p1749_p1 = pnand %p1747_p11, %p1744_p9 }
  0x79   : > { %1752 = shalt.err (!%p1749_p1)
}
  0x7a   : > { %s1753_s16 = scalar_lea.vmem %s391_s27, 512  ;;  %p2643_p8 = pmov %p2642_p2 }
  0x7b   : > { %p1754_p3 = scmp.ne.s32.totalorder %s391_s27, %s1753_s16  ;;  %p1761_p7 = scmp.lt.s32.totalorder %s391_s27, %s391_s27 }
  0x7c   : > { %p1762_p6 = scmp.lt.s32.totalorder %s1753_s16, %s1753_s16 }
  0x7d   : > { %p1756_p12 = pnand %p1754_p3, %p2643_p8 }
  0x7e   : > { %p1763_p10 = por %p1762_p6, %p1761_p7 }
  0x7f   : > { %p1757_p5 = pneg %p1756_p12 }
  0x81   : > { %p1764_p2 = pnand %p1763_p10, %p1757_p5 }
  0x83   : > { %1767 = shalt.err (!%p1764_p2)
}
  0x84   : > { %s2644_s2 = smov 8   ;;  %s2645_s30 = smov 128  }
  0x85   : > { %1578 = dma.hbm_to_vmem [thread:$0]  (!%p2641_p0), %s2640_s7, 512, %s391_s27, [#allocation11], %s2645_s30, %s2645_s30, %s2644_s2  }
  0x86   : > { %s2297_s26 = scalar_lea.hbm %s2582_s1, %s2218_s13  ;;  %s411_s25 = scalar_lea.vmem [#allocation4], %s2215_s24 }
  0x87   : > { %s419_s21 = sshll.u32 %s411_s25, 4  ;;  %s2306_s10 = scalar_lea.hbm %s2584_s3, %s2218_s13  ;;  %s2300_s21 = int_to_ptr.vmem [resolvable:$true] %s419_s21 }
  0x88   : > { %s2646_s11 = sand.u32 1, %s2000_s15   ;;  %s1768_s2 = scalar_lea.hbm %s2297_s26, 128 }
  0x89   : > { %s408_s27 = scalar_lea.sflag [#allocation5], %s2646_s11  ;;  %p1769_p6 = scmp.ne.s32.totalorder %s2297_s26, %s1768_s2 }
  0x8a   : > { %p2647_p10 = scmp.ne.s32.totalorder %s2639_s5, 0  ;;  %s1773_s28 = scalar_lea.hbm %s2582_s1, 256 }
  0x8b   : > { %p1774_p13 = scmp.lt.u32.totalorder %s2297_s26, %s2582_s1  ;;  %p1775_p9 = scmp.lt.u32.totalorder %s1773_s28, %s1768_s2 }
  0x8c   : > { %p1771_p4 = pnand %p1769_p6, %p2647_p10  ;;  %p1777_p1 = scmp.lt.u32.totalorder %s1768_s2, %s2297_s26 }
  0x8d   : > { %p1776_p11 = por %p1775_p9, %p1774_p13 }
  0x8e   : > { %p1772_p0 = pneg %p1771_p4 }
  0x8f   : > { %p1778_p3 = por %p1777_p1, %p1776_p11 }
  0x91   : > { %p1779_p8 = pnand %p1778_p3, %p1772_p0 }
  0x93   : > { %1782 = shalt.err (!%p1779_p8)
}
  0x94   : > { %s1783_s13 = scalar_lea.vmem %s2300_s21, 128  ;;  %s2020_s23 = smov [#allocation4]  }
  0x95   : > { %p1784_p12 = scmp.ne.s32.totalorder %s2300_s21, %s1783_s13  ;;  %s1788_s16 = sshll.u32 %s2020_s23, 4  ;;  %s1789_s16 = int_to_ptr.vmem [resolvable:$false] %s1788_s16 }
  0x96   : > { %s1790_s7 = scalar_lea.vmem %s1789_s16, 256  ;;  %p1791_p2 = scmp.lt.s32.totalorder %s2300_s21, %s1789_s16 }
  0x97   : > { %p1786_p5 = pnand %p1784_p12, %p2647_p10  ;;  %p1792_p6 = scmp.lt.s32.totalorder %s1790_s7, %s1783_s13 }
  0x99   : > { %p1787_p7 = pneg %p1786_p5  ;;  %p1793_p4 = por %p1792_p6, %p1791_p2 }
  0x9b   : > { %p1794_p13 = pnand %p1793_p4, %p1787_p7 }
  0x9d   : > { %1797 = shalt.err (!%p1794_p13)
}
  0x9e   : > { %p2648_p0 = scmp.ne.s32.totalorder %s2637_s19, 0  ;;  %s448_s11 = scalar_lea.vmem [#allocation9], %s2215_s24 }
  0x9f   : > { %s455_s2 = sshll.u32 %s448_s11, 4  ;;  %s1798_s30 = scalar_lea.hbm %s2306_s10, 128  ;;  %s456_s2 = int_to_ptr.vmem [resolvable:$true] %s455_s2 }
  0xa0   : > { %1582 = dma.hbm_to_vmem [thread:$0]  (!%p2648_p0), %s2297_s26, 128, %s2300_s21, %s408_s27  }
  0xa1   : > { %p1799_p9 = scmp.ne.s32.totalorder %s2306_s10, %s1798_s30  ;;  %s1803_s25 = scalar_lea.hbm %s2584_s3, 256 }
  0xa2   : > { %p1804_p3 = scmp.lt.u32.totalorder %s2306_s10, %s2584_s3  ;;  %p1805_p8 = scmp.lt.u32.totalorder %s1803_s25, %s1798_s30 }
  0xa3   : > { %p1801_p11 = pnand %p1799_p9, %p2647_p10  ;;  %p1807_p5 = scmp.lt.u32.totalorder %s1798_s30, %s2306_s10 }
  0xa4   : > { %p1806_p12 = por %p1805_p8, %p1804_p3 }
  0xa5   : > { %p1802_p1 = pneg %p1801_p11 }
  0xa6   : > { %p1808_p7 = por %p1807_p5, %p1806_p12 }
  0xa8   : > { %p1809_p2 = pnand %p1808_p7, %p1802_p1 }
  0xaa   : > { %1812 = shalt.err (!%p1809_p2)
}
  0xab   : > { %s1813_s24 = scalar_lea.vmem %s456_s2, 128  ;;  %s2021_s26 = smov [#allocation9]  }
  0xac   : > { %p1814_p6 = scmp.ne.s32.totalorder %s456_s2, %s1813_s24  ;;  %s1818_s21 = sshll.u32 %s2021_s26, 4  ;;  %s1819_s21 = int_to_ptr.vmem [resolvable:$false] %s1818_s21 }
  0xad   : > { %s1820_s27 = scalar_lea.vmem %s1819_s21, 256  ;;  %p1821_p9 = scmp.lt.s32.totalorder %s456_s2, %s1819_s21 }
  0xae   : > { %p1816_p4 = pnand %p1814_p6, %p2647_p10  ;;  %p1822_p11 = scmp.lt.s32.totalorder %s1820_s27, %s1813_s24 }
  0xb0   : > { %p1817_p13 = pneg %p1816_p4  ;;  %p1823_p0 = por %p1822_p11, %p1821_p9 }
  0xb2   : > { %p1824_p3 = pnand %p1823_p0, %p1817_p13 }
  0xb4   : > { %1827 = shalt.err (!%p1824_p3)
}
  0xb5   : > { %p2649_p8 = scmp.ne.s32.totalorder %s2637_s19, 0  ;;  %p2650_p1 = scmp.ne.s32.totalorder %s2630_s22, 0 }
  0xb6   : > { %s2353_s5 = sand.u32 (!%p2650_p1), 1, %s1996_s14   ;;  %p2651_p10 = scmp.ne.s32.totalorder (!%p2650_p1), %s2627_s20, 0 }
  0xb7   : > { %1588 = dma.hbm_to_vmem [thread:$0]  (!%p2649_p8), %s2306_s10, 128, %s456_s2, %s2239_s9  }
  0xb8   : > { %470 = sbr.rel (%p2650_p1) target bundleno = 1237 (0x4d5), region = 52  ;;  %s2356_s16 = sshll.u32 (!%p2650_p1), %s2353_s5, 3 }
  0xb9   : > { %s473_s7 = scalar_lea.sflag (!%p2650_p1), [#allocation5], %s2353_s5  ;;  %s476_s11 = scalar_lea.vmem (!%p2650_p1), [#allocation4], %s2356_s16 }
  0xbf   : > { %1967 = dma.done.wait (%p2651_p10), %s473_s7, 128  }
  0xc0   : > { %1969 = vsyncadd (%p2651_p10), %s473_s7, 4294967168  ;;  %s481_s9 = sand.u32 1, %s2137_s18   ;;  %s485_s19 = scalar_lea.vmem [#allocation7], %s2356_s16 }
  0xc1   : > { %s482_s22 = scalar_lea.sflag [#allocation8], %s481_s9 }
  0xc2   : > { %1971 = dma.done.wait (%p2651_p10), %s482_s22, 256  }
  0xc3   : > { %1973 = vsyncadd (%p2651_p10), %s482_s22, 4294967040  ;;  %s494_s10 = scalar_lea.vmem [#allocation9], %s2356_s16  ;;  %p2652_p0 = scmp.eq.s32.totalorder %s2137_s18, 0 }
  0xc5   : > { %1975 = dma.done.wait (%p2652_p0), [#allocation11], 1024   ;;  %p2653_p12 = pmov %p2652_p0 }
  0xc6   : > { %v2022_v0 = vmov 0.0|0.0   ;;  %vm2023_vm0 = vmmov 0   ;;  %v2024_v1 = vmov 0.0   ;;  %v580_v2 = vld [vmem:[#allocation12] sm:$0xff]  ;;  %v581_v3 = vld [vmem:[#allocation12 + $0x8] sm:$0xff]  ;;  %v582_v4 = vld [vmem:[#allocation12 + $0x10] sm:$0xff]  ;;  %v587_v16 = vlaneseq }
  0xc7   : > { %1977 = vsyncadd (%p2653_p12), [#allocation11], 4294966272  ;;  %1544 = vmatprep.subr.bf16.mxu1 %v2022_v0  ;;  %1538 = vmatprep.subr.bf16.mxu0 %v2022_v0  ;;  %v1545_v5 = vpack.c.bf16 %v581_v3, %v580_v2  ;;  %v583_v6 = vld [vmem:[#allocation12 + $0x18] sm:$0xff]  ;;  %v576_v7 = vld [vmem:[#allocation10] sm:$0xff]  ;;  %vm592_vm1 = vcmask 261120   ;;  %s2398_s28 = sshll.u32 %s2004_s0, 7 }
  0xc8   : > { %1515 = vmatprep.mubr.msk.f32.mxu1 %vm2023_vm0, %v2024_v1  ;;  %1504 = vmatprep.mubr.msk.f32.mxu0 %vm2023_vm0, %v2024_v1  ;;  %v577_v8 = vld [vmem:[#allocation10 + $0x8] sm:$0xff]  ;;  %v578_v10 = vld [vmem:[#allocation10 + $0x10] sm:$0xff]  ;;  %v579_v11 = vld [vmem:[#allocation10 + $0x18] sm:$0xff]  ;;  %v1548_v12 = vpack.c.bf16 %v583_v6, %v582_v4  ;;  %v588_v17 = vshrl.u32 %v587_v16, 7  ;;  %s909_s25 = sadd.s32 1, %s2398_s28  ;;  %s911_s23 = sadd.s32 2, %s2398_s28 }
  0xc9   : > { %v1539_v9 = vpack.c.bf16 %v577_v8, %v576_v7  ;;  %1546 = vmatpush3.bf16.msra.mxu1 %v1545_v5  ;;  %v1542_v13 = vpack.c.bf16 %v579_v11, %v578_v10  ;;  %v573_v14 = vld [vmem:[%s485_s19] sm:$0xff]  ;;  %v572_v15 = vld [vmem:[%s476_s11] sm:$0xff]  ;;  %s910_s13 = sld [smem:[#allocation3 + %s909_s25]]  ;;  %v906_v28 = vand.u32 127, %v587_v16  ;;  %p569_p5 = scmp.lt.s32.totalorder %s2004_s0, 1 }
  0xca   : > { %1547 = vmatprep.subr.bf16.mxu1 %v2022_v0  ;;  %v589_v18 = vsub.s32 0, %v588_v17  ;;  %v584_v19 = vld [vmem:[%s2587_s6] sm:$0x1]  ;;  %s908_s24 = sld [smem:[#allocation3 + %s2398_s28]]  ;;  %s561_s19 = scalar_lea.vmem [#allocation16], %s2356_s16 }
  0xcb   : > { %1540 = vmatpush3.bf16.msra.mxu0 %v1539_v9  ;;  %v1458_v20 = vld [vmem:[%s2589_s8] ss:$0 sm:$0xff]  ;;  %s912_s26 = sld [smem:[#allocation3 + %s911_s23]]  ;;  %vm921_vm7 = vcmp.eq.s32.totalorder %v906_v28, 0  ;;  %s2675_s0 = smov (!%p569_p5, %s2004_s0), 1 }
  0xcc   : > { %1541 = vmatprep.subr.bf16.mxu0 %v2022_v0  ;;  %v590_v21 = vrot.slane %v584_v19, %v589_v18  ;;  %s571_s22 = scalar_lea.vmem %s2585_s4, %s2675_s0  ;;  %v574_v59 = vld [vmem:[%s494_s10] sm:$0xff]  ;;  %s568_s0 = scalar_lea.vmem [#allocation17], %s2356_s16 }
  0xcd   : > { %1549 = vmatpush3.bf16.msra.mxu1 %v1548_v12  ;;  %v1465_v35 = vld [vmem:[%s571_s22] ss:$0 sm:$0xff]  ;;  %s2432_s2 = scalar_lea.hbm %s2593_s12, %s2398_s28  ;;  %s1188_s30 = sshll.u32 %s568_s0, 4  ;;  %s1189_s30 = int_to_ptr.vmem [resolvable:$true] %s1188_s30 }
  0xce   : > { %1523 = vmatprep.subr.mxu1 %v2024_v1  ;;  %s1132_s17 = scalar_lea.sflag [#allocation18], %s2353_s5  ;;  %s1828_s25 = scalar_lea.vmem %s1189_s30, 128 }
  0xcf   : > { %1543 = vmatpush3.bf16.msra.mxu0 %v1542_v13  ;;  %s915_s21 = sadd.s32 1, %s910_s13  ;;  %v913_v31 = vstv %s910_s13  ;;  %p1829_p7 = scmp.ne.s32.totalorder %s1189_s30, %s1828_s25 }
  0xd0   : > { %1518 = vmatprep.subr.mxu0 %v2024_v1  ;;  %1516 = vmatmul.mubr.msk.f32.vlgmr.msra.gmra.mrb[0].mxu1 %vm592_vm1, %v573_v14  ;;  %s925_s27 = sadd.s32 1, %s908_s24  ;;  %v916_v29 = vstv %s915_s21  ;;  %vm928_vm5 = vcmp.le.s32.totalorder %v906_v28, %v913_v31  ;;  %vm2405_vm9 = vcmp.eq.s32.totalorder %v588_v17, %v913_v31  ;;  %p2656_p2 = scmp.ne.s32.totalorder %s2635_s29, 0 }
  0xd1   : > { %1525 = vmatprep.mubr.msk.f32.mxu1 %vm2023_vm0, %v2024_v1  ;;  %v918_v30 = vstv %s912_s26  ;;  %v926_v32 = vstv %s925_s27  ;;  %vm917_vm2 = vcmp.ge.s32.totalorder %v906_v28, %v916_v29  ;;  %s2025_s13 = smov [#allocation17]  }
  0xd2   : > { %1505 = vmatmul.mubr.msk.f32.vlgmr.msra.gmra.mrb[0].mxu0 %vm592_vm1, %v572_v15  ;;  %vm919_vm3 = vcmp.le.s32.totalorder %v906_v28, %v918_v30  ;;  %vm927_vm4 = vcmp.ge.s32.totalorder %v906_v28, %v926_v32  ;;  %vm924_vm11 = vcmp.eq.s32.totalorder %v588_v17, %v918_v30  ;;  %p1830_p6 = pnand %p1829_p7, %p2656_p2  ;;  %s1832_s23 = sshll.u32 %s2025_s13, 4  ;;  %s1833_s23 = int_to_ptr.vmem [resolvable:$false] %s1832_s23 }
  0xd3   : > { %1520 = vmatprep.mubr.msk.f32.mxu0 %vm2023_vm0, %v2024_v1  ;;  %vm920_vm6 = vmand %vm917_vm2, %vm919_vm3  ;;  %s1834_s24 = scalar_lea.vmem %s1833_s23, 256  ;;  %p1835_p13 = scmp.lt.s32.totalorder %s1189_s30, %s1833_s23 }
  0xd4   : > { %vm929_vm8 = vmand %vm927_vm4, %vm928_vm5  ;;  %p1831_p4 = pneg %p1830_p6  ;;  %p1836_p9 = scmp.lt.s32.totalorder %s1834_s24, %s1828_s25 }
  0xd5   : > { %vm922_vm10 = vmor %vm920_vm6, %vm921_vm7 }
  0xd6   : > { %vm930_vm12 = vmor %vm929_vm8, %vm921_vm7  ;;  %p1837_p11 = por %p1836_p9, %p1835_p13 }
  0xd7   : > { %vm923_vm13 = vmand %vm2405_vm9, %vm922_vm10 }
  0xd8   : > { %vm931_vm14 = vmand %vm924_vm11, %vm930_vm12  ;;  %p1838_p3 = pnand %p1837_p11, %p1831_p4 }
  0xd9   : > { %vm932_vm15 = vmor %vm923_vm13, %vm931_vm14 }
 0x1a3   : > { %v741_v22 = vpop.f32.mrb[0].mxu1 }
 0x1a4   : > { %v742_v23 = vadd.f32 %v1458_v20, %v741_v22  ;;  %v1517_v24 = vpop.f32.mrb[1].mxu1 }
 0x1a5   : > { %v662_v25 = vpop.f32.mrb[0].mxu0 }
 0x1a6   : > { %v663_v26 = vadd.f32 %v662_v25, %v590_v21  ;;  %v1506_v27 = vpop.f32.mrb[1].mxu0  ;;  %1519 = vmatpush3.xpose.msk.msra.mxu0 %vm592_vm1, %v742_v23  ;;  %1524 = vmatpush3.xpose.msk.msra.mxu1 %vm592_vm1, %v742_v23 }
 0x1a7   : > { %1533 = vmatprep.subr.mxu1 %v2024_v1  ;;  %1528 = vmatprep.subr.mxu0 %v2024_v1 }
 0x1a9   : > { %1526 = vmatmul.mubr.msk.f32.vlgmr.msra.gmra.mrb[2].mxu1 %vm592_vm1, %v584_v19  ;;  %1521 = vmatmul.mubr.msk.f32.vlgmr.msra.gmra.mrb[2].mxu0 %vm592_vm1, %v663_v26 }
 0x1aa   : > { %1535 = vmatprep.mubr.msk.f32.mxu1 %vm2023_vm0, %v2024_v1  ;;  %1530 = vmatprep.mubr.msk.f32.mxu0 %vm2023_vm0, %v2024_v1  ;;  %vm941_vm0 = vcmask 64512  }
 0x1ab   : > { %1534 = vmatpush3.msra.mxu1 %v574_v59  ;;  %1529 = vmatpush3.msra.mxu0 %v574_v59 }
 0x27c   : > { %v890_v34 = vpop.f32.mrb[2].mxu1  ;;  %v817_v36 = vpop.f32.mrb[2].mxu0 }
 0x27d   : > { %v894_v37 = vmul.f32 0.35355338, %v890_v34  ;;  %v1527_v38 = vpop.f32.mrb[3].mxu1  ;;  %v821_v39 = vmul.f32 0.17677669, %v817_v36  ;;  %v1522_v40 = vpop.f32.mrb[3].mxu0 }
 0x27f   : > { %v898_v41 = vrot.slane %v894_v37, %v589_v18  ;;  %v939_v42 = vadd.f32 %v1465_v35, %v821_v39 }
 0x281   : > { %v899_v43 = vsub.f32 %v898_v41, %v821_v39  ;;  %v940_v44 = vsel %vm932_vm15, -1e+30, %v939_v42 }
 0x282   : > { %v942_v48 = vsel %vm941_vm0, %v940_v44, -inf }
 0x283   : > { %v1026_v45 = vadd.f32 %v1465_v35, %v899_v43 }
 0x285   : > { %v1027_v46 = vsel %vm932_vm15, -1e+30, %v1026_v45 }
 0x286   : > { %v1028_v47 = vsel %vm941_vm0, %v1027_v46, -inf }
 0x287   : > { %1029 = vmax.xlane.f32.xlu0 %v1028_v47 }
 0x28b   : > { %943 = vmax.xlane.f32.xlu0 %v942_v48 }
 0x314   : > { %v1030_v49 = vpop.xlane.xlu0 %1029 }
 0x315   : > { %v1031_v50 = vsub.f32 %v1027_v46, %v1030_v49 }
 0x317   : > { %v1032_v51 = vmul.f32 1.442695, %v1031_v50 }
 0x318   : > { %v944_v52 = vpop.xlane.xlu0 %943 }
 0x319   : > { %1664 = vpow2.f32 %v1032_v51  ;;  %v945_v53 = vsub.f32 %v940_v44, %v944_v52 }
 0x31b   : > { %v946_v54 = vmul.f32 1.442695, %v945_v53 }
 0x31d   : > { %1666 = vpow2.f32 %v946_v54 }
 0x323   : > { %v1665_v55 = vpop.eup %1664 }
 0x324   : > { %v1034_v56 = vsel %vm941_vm0, %v1665_v55, 0.0 }
 0x325   : > { %1035 = vadd.xlane.f32.xlu1 %v1034_v56 }
 0x327   : > { %v1667_v57 = vpop.eup %1666 }
 0x328   : > { %v948_v58 = vsel %vm941_vm0, %v1667_v57, 0.0 }
 0x329   : > { %949 = vadd.xlane.f32.xlu1 %v948_v58 }
 0x3b2   : > { %v1036_v60 = vpop.xlane.xlu1 %1035 }
 0x3b3   : > { %1668 = vrcp.f32 %v1036_v60 }
 0x3b6   : > { %v950_v61 = vpop.xlane.xlu1 %949 }
 0x3b7   : > { %1670 = vrcp.f32 %v950_v61 }
 0x3bd   : > { %v1669_v62 = vpop.eup %1668 }
 0x3be   : > { %v1038_v63 = vmul.f32 %v1669_v62, %v1665_v55 }
 0x3c0   : > { %1536 = vmatmul.mubr.msk.f32.vlgmr.msra.gmra.mrb[4].mxu1 %vm941_vm0, %v1038_v63  ;;  %1115 = vst.msk [vmem:[%s568_s0] sm:$0xff] %vm941_vm0, %v1038_v63 }
 0x3c1   : > { %v1671_v0 = vpop.eup %1670 }
 0x3c2   : > { %v952_v1 = vmul.f32 %v1671_v0, %v1667_v57 }
 0x3c4   : > { %1531 = vmatmul.mubr.msk.f32.vlgmr.msra.gmra.mrb[4].mxu0 %vm941_vm0, %v952_v1  ;;  %1114 = vst.msk [vmem:[%s561_s19] sm:$0xff] %vm941_vm0, %v952_v1 }
 0x3c5   : > { %1841 = shalt.err (!%p1838_p3)
}
 0x3c6   : > { %s1842_s26 = scalar_lea.hbm %s2432_s2, 128  ;;  %s1846_s7 = scalar_lea.hbm %s2593_s12, 256 }
 0x3c7   : > { %p1843_p8 = scmp.ne.s32.totalorder %s2432_s2, %s1842_s26  ;;  %p1847_p0 = scmp.lt.u32.totalorder %s2432_s2, %s2593_s12 }
 0x3c8   : > { %p1848_p12 = scmp.lt.u32.totalorder %s1846_s7, %s1842_s26  ;;  %p1850_p7 = scmp.lt.u32.totalorder %s1842_s26, %s2432_s2 }
 0x3c9   : > { %p1844_p1 = pnand %p1843_p8, %p2656_p2 }
 0x3ca   : > { %p1849_p5 = por %p1848_p12, %p1847_p0 }
 0x3cb   : > { %p1845_p10 = pneg %p1844_p1 }
 0x3cc   : > { %p1851_p6 = por %p1850_p7, %p1849_p5 }
 0x3ce   : > { %p1852_p4 = pnand %p1851_p6, %p1845_p10 }
 0x3d0   : > { %1855 = shalt.err (!%p1852_p4)
}
 0x3d1   : > { %1567 = dma.vmem_to_hbm [thread:$0]  (%p2656_p2), %s1189_s30, 128, %s2432_s2, %s1132_s17  }
 0x3d2   : > { %s554_s0 = scalar_lea.vmem [#allocation14], %s2356_s16  ;;  %s1174_s20 = sshll.u32 %s561_s19, 4  ;;  %s2472_s20 = int_to_ptr.vmem [resolvable:$true] %s1174_s20 }
 0x3d3   : > { %s1160_s10 = sshll.u32 %s554_s0, 4  ;;  %s2657_s23 = sld [smem:[#allocation36_spill]]  ;;  %s2464_s10 = int_to_ptr.vmem [resolvable:$true] %s1160_s10 }
 0x3d4   : > { %s547_s26 = scalar_lea.vmem [#allocation13], %s2356_s16  ;;  %s2658_s30 = sld [smem:[#allocation37_spill]] }
 0x3d5   : > { %s1146_s21 = sshll.u32 %s547_s26, 4  ;;  %s2659_s11 = sld [smem:[#allocation35_spill]]  ;;  %s2481_s21 = int_to_ptr.vmem [resolvable:$true] %s1146_s21 }
 0x3d6   : > { %s2485_s25 = scalar_lea.sflag [#allocation15], %s481_s9  ;;  %s1856_s13 = scalar_lea.vmem %s2464_s10, 128 }
 0x3d7   : > { %p1857_p13 = scmp.ne.s32.totalorder %s2464_s10, %s1856_s13  ;;  %s2026_s27 = smov [#allocation14]  }
 0x3d8   : > { %s1860_s2 = sshll.u32 %s2026_s27, 4  ;;  %s1861_s2 = int_to_ptr.vmem [resolvable:$false] %s1860_s2 }
 0x3d9   : > { %s2459_s24 = scalar_lea.hbm %s2657_s23, %s2398_s28  ;;  %p1858_p9 = pnand %p1857_p13, %p2656_p2 }
 0x3da   : > { %s2470_s17 = scalar_lea.hbm %s2658_s30, %s2398_s28  ;;  %p1863_p3 = scmp.lt.s32.totalorder %s2464_s10, %s1861_s2 }
 0x3db   : > { %s2479_s22 = scalar_lea.hbm %s2659_s11, %s2398_s28  ;;  %p1859_p11 = pneg %p1858_p9 }
 0x493   : > { %v1108_v2 = vpop.f32.mrb[4].mxu1 }
 0x494   : > { %1113 = vst.msk [vmem:[%s554_s0] sm:$0xff] %vm592_vm1, %v1108_v2  ;;  %v1537_v3 = vpop.f32.mrb[5].mxu1  ;;  %s1862_s0 = scalar_lea.vmem %s1861_s2, 256 }
 0x495   : > { %p1864_p8 = scmp.lt.s32.totalorder %s1862_s0, %s1856_s13 }
 0x497   : > { %p1865_p1 = por %p1864_p8, %p1863_p3 }
 0x499   : > { %p1866_p10 = pnand %p1865_p1, %p1859_p11 }
 0x49b   : > { %1869 = shalt.err (!%p1866_p10)
}
 0x49c   : > { %s1870_s18 = scalar_lea.hbm %s2459_s24, 128  ;;  %s1874_s19 = scalar_lea.hbm %s2657_s23, 256 }
 0x49d   : > { %p1871_p0 = scmp.ne.s32.totalorder %s2459_s24, %s1870_s18  ;;  %p1875_p7 = scmp.lt.u32.totalorder %s2459_s24, %s2657_s23 }
 0x49e   : > { %p1876_p6 = scmp.lt.u32.totalorder %s1874_s19, %s1870_s18  ;;  %p1878_p13 = scmp.lt.u32.totalorder %s1870_s18, %s2459_s24 }
 0x49f   : > { %p1872_p12 = pnand %p1871_p0, %p2656_p2 }
 0x4a0   : > { %p1877_p4 = por %p1876_p6, %p1875_p7 }
 0x4a1   : > { %p1873_p5 = pneg %p1872_p12 }
 0x4a2   : > { %p1879_p9 = por %p1878_p13, %p1877_p4 }
 0x4a4   : > { %p1880_p11 = pnand %p1879_p9, %p1873_p5 }
 0x4a6   : > { %1883 = shalt.err (!%p1880_p11)
}
 0x4a7   : > { %1565 = dma.vmem_to_hbm [thread:$0]  (%p2656_p2), %s2464_s10, 128, %s2459_s24, %s2485_s25  }
 0x4a8   : > { %s1884_s13 = scalar_lea.vmem %s2472_s20, 128  ;;  %s2027_s2 = smov [#allocation16]  }
 0x4a9   : > { %p1885_p3 = scmp.ne.s32.totalorder %s2472_s20, %s1884_s13  ;;  %s1888_s0 = sshll.u32 %s2027_s2, 4  ;;  %s1889_s0 = int_to_ptr.vmem [resolvable:$false] %s1888_s0 }
 0x4aa   : > { %s1890_s18 = scalar_lea.vmem %s1889_s0, 256  ;;  %p1891_p10 = scmp.lt.s32.totalorder %s2472_s20, %s1889_s0 }
 0x4ab   : > { %p1886_p8 = pnand %p1885_p3, %p2656_p2  ;;  %p1892_p0 = scmp.lt.s32.totalorder %s1890_s18, %s1884_s13 }
 0x4ad   : > { %p1887_p1 = pneg %p1886_p8  ;;  %p1893_p12 = por %p1892_p0, %p1891_p10 }
 0x4af   : > { %p1894_p5 = pnand %p1893_p12, %p1887_p1 }
 0x4b1   : > { %1897 = shalt.err (!%p1894_p5)
}
 0x4b2   : > { %s1898_s10 = scalar_lea.hbm %s2470_s17, 128  ;;  %s1902_s28 = scalar_lea.hbm %s2658_s30, 256 }
 0x4b3   : > { %p1899_p7 = scmp.ne.s32.totalorder %s2470_s17, %s1898_s10  ;;  %p1903_p13 = scmp.lt.u32.totalorder %s2470_s17, %s2658_s30 }
 0x4b4   : > { %p1904_p9 = scmp.lt.u32.totalorder %s1902_s28, %s1898_s10  ;;  %p1906_p3 = scmp.lt.u32.totalorder %s1898_s10, %s2470_s17 }
 0x4b5   : > { %p1900_p6 = pnand %p1899_p7, %p2656_p2 }
 0x4b6   : > { %p1905_p11 = por %p1904_p9, %p1903_p13 }
 0x4b7   : > { %p1901_p4 = pneg %p1900_p6 }
 0x4b8   : > { %p1907_p8 = por %p1906_p3, %p1905_p11 }
 0x4ba   : > { %p1908_p1 = pnand %p1907_p8, %p1901_p4 }
 0x4bc   : > { %1911 = shalt.err (!%p1908_p1)
}
 0x4bd   : > { %1566 = dma.vmem_to_hbm [thread:$0]  (%p2656_p2), %s2472_s20, 128, %s2470_s17, %s2485_s25   ;;  %v1022_v4 = vpop.f32.mrb[4].mxu0 }
 0x4be   : > { %1112 = vst.msk [vmem:[%s547_s26] sm:$0xff] %vm592_vm1, %v1022_v4  ;;  %v1532_v5 = vpop.f32.mrb[5].mxu0  ;;  %s1117_s27 = scalar_lea.sflag [#allocation6], %s2353_s5  ;;  %s1912_s13 = scalar_lea.vmem %s2481_s21, 128 }
 0x4bf   : > { %p1913_p10 = scmp.ne.s32.totalorder %s2481_s21, %s1912_s13  ;;  %s2028_s2 = smov [#allocation13]  }
 0x4c0   : > { %s1916_s0 = sshll.u32 %s2028_s2, 4  ;;  %s1917_s0 = int_to_ptr.vmem [resolvable:$false] %s1916_s0 }
 0x4c1   : > { %p1914_p0 = pnand %p1913_p10, %p2656_p2  ;;  %s1918_s18 = scalar_lea.vmem %s1917_s0, 256 }
 0x4c2   : > { %p1919_p5 = scmp.lt.s32.totalorder %s2481_s21, %s1917_s0  ;;  %p1920_p7 = scmp.lt.s32.totalorder %s1918_s18, %s1912_s13 }
 0x4c3   : > { %p1915_p12 = pneg %p1914_p0 }
 0x4c4   : > { %p1921_p6 = por %p1920_p7, %p1919_p5 }
 0x4c6   : > { %p1922_p4 = pnand %p1921_p6, %p1915_p12 }
 0x4c8   : > { %1925 = shalt.err (!%p1922_p4)
}
 0x4c9   : > { %s1926_s5 = scalar_lea.hbm %s2479_s22, 128  ;;  %s1930_s26 = scalar_lea.hbm %s2659_s11, 256 }
 0x4ca   : > { %p1927_p13 = scmp.ne.s32.totalorder %s2479_s22, %s1926_s5  ;;  %p1931_p3 = scmp.lt.u32.totalorder %s2479_s22, %s2659_s11 }
 0x4cb   : > { %p1932_p8 = scmp.lt.u32.totalorder %s1930_s26, %s1926_s5  ;;  %p1934_p10 = scmp.lt.u32.totalorder %s1926_s5, %s2479_s22 }
 0x4cc   : > { %p1928_p9 = pnand %p1927_p13, %p2656_p2 }
 0x4cd   : > { %p1933_p1 = por %p1932_p8, %p1931_p3 }
 0x4ce   : > { %p1929_p11 = pneg %p1928_p9 }
 0x4cf   : > { %p1935_p0 = por %p1934_p10, %p1933_p1 }
 0x4d1   : > { %p1936_p12 = pnand %p1935_p0, %p1929_p11 }
 0x4d3   : > { %1939 = shalt.err (!%p1936_p12)
}
 0x4d4   : > { %1564 = dma.vmem_to_hbm [thread:$0]  (%p2656_p2), %s2481_s21, 128, %s2479_s22, %s1117_s27  }
 0x4d5 PF: > { %s2660_s10 = sld [smem:[#allocation26_spill]]  ;;  %s2661_s24 = sld [smem:[#allocation29_spill]] }
 0x4d6   : > { %s2662_s9 = sld [smem:[#allocation28_spill]] }
 0x4db   : > { %s1200_s28 = sand.u32 1, %s2660_s10   ;;  %p2663_p5 = scmp.ne.s32.totalorder %s2661_s24, 0 }
 0x4dc   : > { %p2664_p7 = scmp.ge.s32.totalorder %s2662_s9, 2  ;;  %s1201_s19 = scalar_lea.sflag [#allocation6], %s1200_s28 }
 0x4de   : > { %p1590_p6 = pnand %p2664_p7, %p2663_p5 }
 0x4e0   : > { %1979 = dma.done.wait (!%p1590_p6), %s1201_s19, 128  }
 0x4e1   : > { %1981 = vsyncadd (!%p1590_p6), %s1201_s19, 4294967168  ;;  %s2665_s7 = sadd.s32 4294967294, %s2662_s9  }
 0x4e2   : > { %s1209_s13 = sand.u32 1, %s2665_s7  }
 0x4e3   : > { %s1210_s2 = scalar_lea.sflag [#allocation15], %s1209_s13 }
 0x4e4   : > { %1983 = dma.done.wait (!%p1590_p6), %s1210_s2, 256  }
 0x4e5   : > { %1985 = vsyncadd (!%p1590_p6), %s1210_s2, 4294967040  ;;  %s1228_s29 = scalar_lea.sflag [#allocation18], %s1200_s28 }
 0x4e6   : > { %1987 = dma.done.wait (!%p1590_p6), %s1228_s29, 128  }
 0x4e7   : > { %1989 = vsyncadd (!%p1590_p6), %s1228_s29, 4294967168  ;;  %s43_s17 = sadd.s32 1, %s2662_s9   ;;  %s2666_s21 = sld [smem:[#allocation31_spill]] }
 0x4e8   : > { %p40_p2 = scmp.ge.s32.totalorder %s43_s17, 4   ;;  %s2667_s0 = sld [smem:[#allocation27_spill]] }
 0x4e9   : > { %s2668_s16 = sld [smem:[#allocation30_spill]]  ;;  %s2669_s13 = smov %s1996_s14 }
 0x4ea   : > { %s2670_s14 = smov %s2000_s15  ;;  %42 = sbr.rel (!%p40_p2) target bundleno = 26 (0x1a), region = 181 }
 0x4ed   : > { %s2671_s15 = smov %s2666_s21 }
 0x4f1   :  { %1233 = vsyncpa [#allocation5], 1 }
 0x4f2   :  { %1235 = vsyncpa [#allocation5 + $0x1], 1 }
 0x4f3   :  { %1236 = vsyncpa [#allocation8], 1 }
 0x4f4   :  { %1238 = vsyncpa [#allocation8 + $0x1], 1 }
 0x4f5   :  { %1239 = vsyncpa [#allocation11], 1 }
 0x4f6   :  { %1240 = vsyncpa [#allocation6], 1 }
 0x4f7   :  { %1242 = vsyncpa [#allocation6 + $0x1], 1 }
 0x4f8   :  { %1243 = vsyncpa [#allocation15], 1 }
 0x4f9   :  { %1245 = vsyncpa [#allocation15 + $0x1], 1 }
 0x4fa   :  { %1246 = vsyncpa [#allocation18], 1 }
 0x4fb   :  { %1248 = vsyncpa [#allocation18 + $0x1], 1 }

</bundles_post_ra>
